<compile_context>
chip_gen: v7x
topology: tpu7x:2x2x1
jax: 0.10.0
libtpu: 0.0.40
codegen_flags: <defaults>
</compile_context>

<pallas_src>
import jax
import jax.numpy as jnp
from jax.experimental import pallas as pl
from jax.experimental.pallas import tpu as pltpu


# ---------------------------------------------------------------------------
# Kernel: a single (B, 128) @ (128, 128) dot + bias.  x arrives f32 and is
# cast to bf16 on the VPU; the MXU accumulates in f32; bias added in f32.
# ---------------------------------------------------------------------------
def _affine_kernel(x_ref, w_ref, b_ref, out_ref):
    x = x_ref[...].astype(jnp.bfloat16)          # in-kernel cast (VPU, free)
    out_ref[...] = (
        jnp.dot(x, w_ref[...], preferred_element_type=jnp.float32) + b_ref[...]
    )


# ---------------------------------------------------------------------------
# Parameter init (PyTorch nn.Linear style: U(-1/sqrt(fan_in), +1/sqrt(fan_in)))
# Weights stored (in, out) so forward is x @ W + b.
# ---------------------------------------------------------------------------
def init_params(key, factor=0.25, dtype=jnp.float32):
    linear1N = int(512 * factor)
    linear2N = int(2048 * factor)
    linear3N = int(512 * factor)
    linear4N = 2 * linear3N
    linear5N = int(512 * factor)

    layer_dims = [
        ("fc1",   linear1N, linear2N),
        ("fc2a1", linear2N, linear3N),
        ("fc2a2", linear3N, linear3N),
        ("fc2b1", linear2N, linear3N),
        ("fc2b2", linear3N, linear3N),
        ("fc3",   linear4N, linear5N),
        ("fc4",   linear5N, linear5N),
    ]

    params = {}
    keys = jax.random.split(key, 2 * len(layer_dims))
    for i, (name, fan_in, fan_out) in enumerate(layer_dims):
        bound = 1.0 / (fan_in ** 0.5)
        w = jax.random.uniform(keys[2 * i], (fan_in, fan_out), dtype,
                               minval=-bound, maxval=bound)
        b = jax.random.uniform(keys[2 * i + 1], (1, fan_out), dtype,
                               minval=-bound, maxval=bound)
        params[name] = (w, b)
    return params, (linear1N, linear5N)


# ---------------------------------------------------------------------------
# Host-side affine collapse (all in f32):
#   out = x @ W_eff + b_eff
#   W_eff = W1 @ [Wa1@Wa2 | Wb1@Wb2] @ W3 @ W4                    (128, 128)
#   b_eff = ((b1 @ Wbr + bbr) @ W3 + b3) @ W4 + b4                (1, 128)
# ---------------------------------------------------------------------------
def pack_params(params):
    w1, b1 = params["fc1"]
    wa1, ba1 = params["fc2a1"]
    wa2, ba2 = params["fc2a2"]
    wb1, bb1 = params["fc2b1"]
    wb2, bb2 = params["fc2b2"]
    w3, b3 = params["fc3"]
    w4, b4 = params["fc4"]

    # branch collapse: [xa2 | xb2] = h1 @ Wbr + bbr
    wbr = jnp.concatenate([wa1 @ wa2, wb1 @ wb2], axis=1)          # (512, 256)
    bbr = jnp.concatenate([ba1 @ wa2 + ba2, bb1 @ wb2 + bb2], axis=1)  # (1, 256)

    w_eff = w1 @ wbr @ w3 @ w4                                     # (128, 128)
    b_eff = ((b1 @ wbr + bbr) @ w3 + b3) @ w4 + b4                 # (1, 128)

    return {
        "w_eff": w_eff.astype(jnp.bfloat16),   # 32 KiB weight DMA
        "b_eff": b_eff.astype(jnp.float32),    # 512 B, added in f32
    }


# ---------------------------------------------------------------------------
# Wrapper
# ---------------------------------------------------------------------------
def parallel_model_forward(x, packed):
    """x: (B, C, 1, 1) NCHW-like input (C = linear1N)."""
    B = x.shape[0]
    in_dim = packed["w_eff"].shape[0]
    out_dim = packed["w_eff"].shape[1]

    # Explicit (metadata-only) reshape instead of squeeze(): fails loudly if
    # spatial dims are not all 1.
    assert int(jnp.prod(jnp.array(x.shape[1:]))) == in_dim, (
        f"expected trailing dims to flatten to {in_dim}, got {x.shape}")
    x2 = x.reshape(B, in_dim)                  # stays f32; cast happens in-kernel

    out = pl.pallas_call(
        _affine_kernel,
        out_shape=jax.ShapeDtypeStruct((B, out_dim), jnp.float32),
        in_specs=[pl.BlockSpec(memory_space=pltpu.MemorySpace.VMEM)] * 3,
        out_specs=pl.BlockSpec(memory_space=pltpu.MemorySpace.VMEM),
        compiler_params=pltpu.CompilerParams(vmem_limit_bytes=4 * 1024 * 1024),
    )(x2, packed["w_eff"], packed["b_eff"])
    return out


# ---------------------------------------------------------------------------
# References
# ---------------------------------------------------------------------------
def reference_forward_f32(x, params):
    """Pure-JAX f32 per-layer reference mirroring the PyTorch module exactly."""
    x2 = x.reshape(x.shape[0], -1)
    w1, b1 = params["fc1"]
    wa1, ba1 = params["fc2a1"]
    wa2, ba2 = params["fc2a2"]
    wb1, bb1 = params["fc2b1"]
    wb2, bb2 = params["fc2b2"]
    w3, b3 = params["fc3"]
    w4, b4 = params["fc4"]
    h1 = x2 @ w1 + b1
    xa2 = (h1 @ wa1 + ba1) @ wa2 + ba2
    xb2 = (h1 @ wb1 + bb1) @ wb2 + bb2
    y = jnp.concatenate([xa2, xb2], axis=1) @ w3 + b3
    return y @ w4 + b4


def reference_forward_collapsed(x, packed):
    """Pure-JAX reference using the exact same bf16 W_eff / f32-accum math."""
    x2 = x.reshape(x.shape[0], -1).astype(jnp.bfloat16)
    return (jnp.dot(x2, packed["w_eff"], preferred_element_type=jnp.float32)
            + packed["b_eff"])


# ---------------------------------------------------------------------------
if __name__ == "__main__":
    key = jax.random.PRNGKey(0)
    k_params, k_x = jax.random.split(key)

    factor = 0.25  # linear1N=128, linear2N=512, linear3N=128, linear4N=256, linear5N=128
    params, (in_dim, out_dim) = init_params(k_params, factor=factor)
    packed = pack_params(params)

    B = 2
    x = jax.random.normal(k_x, (B, in_dim, 1, 1), jnp.float32)  # NCHW-like

    out = parallel_model_forward(x, packed)
    out = jax.block_until_ready(out)
    assert out.shape == (B, out_dim), out.shape

    # tight check: same bf16 W_eff operand, same f32 accumulation
    ref_c = reference_forward_collapsed(x, packed)
    assert jnp.allclose(out, ref_c, atol=1e-4, rtol=1e-4), "mismatch vs collapsed ref"

    # check vs the pure-f32 per-layer PyTorch-equivalent math (only a single
    # bf16 rounding of W_eff and x separates the two -> tight tolerance)
    ref_f32 = reference_forward_f32(x, params)
    assert jnp.allclose(out, ref_f32, atol=2e-2, rtol=2e-2), "mismatch vs f32 reference"

    print("KERNEL_OK")
</pallas_src>

<mosaic_0001>
module attributes {stable_mosaic.version = 11 : i64} {
  func.func @_affine_kernel(%arg0: memref<2x128xf32, #tpu.memory_space<vmem>>, %arg1: memref<128x128xbf16, #tpu.memory_space<vmem>>, %arg2: memref<1x128xf32, #tpu.memory_space<vmem>>, %arg3: memref<2x128xf32, #tpu.memory_space<vmem>>) attributes {dimension_semantics = [], scalar_prefetch = 0 : i64, scratch_operands = 0 : i64, tpu.core_type = #tpu.core_type<tc>} {
    %c0 = arith.constant 0 : index
    %c0_0 = arith.constant 0 : index
    %0 = vector.load %arg0[%c0, %c0_0] : memref<2x128xf32, #tpu.memory_space<vmem>>, vector<2x128xf32>
    %1 = arith.truncf %0 : vector<2x128xf32> to vector<2x128xbf16>
    %c0_1 = arith.constant 0 : index
    %c0_2 = arith.constant 0 : index
    %2 = vector.load %arg1[%c0_1, %c0_2] : memref<128x128xbf16, #tpu.memory_space<vmem>>, vector<128x128xbf16>
    %cst = arith.constant dense<0.000000e+00> : vector<2x128xf32>
    %3 = tpu.matmul %1, %2, %cst {dimension_numbers = #tpu.dot_dimension_numbers<[1], [0], [0], [1], [0, 0, 1, 1], [], []>} : vector<2x128xbf16>, vector<128x128xbf16>, vector<2x128xf32> -> vector<2x128xf32>
    %c0_3 = arith.constant 0 : index
    %c0_4 = arith.constant 0 : index
    %4 = vector.load %arg2[%c0_3, %c0_4] : memref<1x128xf32, #tpu.memory_space<vmem>>, vector<1x128xf32>
    %5 = vector.broadcast %4 : vector<1x128xf32> to vector<2x128xf32>
    %6 = arith.addf %3, %5 : vector<2x128xf32>
    %c0_5 = arith.constant 0 : index
    %c0_6 = arith.constant 0 : index
    %7 = vector.load %arg3[%c0_5, %c0_6] : memref<2x128xf32, #tpu.memory_space<vmem>>, vector<2x128xf32>
    tpu.vector_store %arg3[%c0_5, %c0_6], %6 {strides = array<i32>} : memref<2x128xf32, #tpu.memory_space<vmem>>, vector<2x128xf32>,
    return
  }
}

</mosaic_0001>

<bundles_post_ra>
// kernel: tpu_custom_call.1
= control target key start
LH: loop header
LB: loop body
LE: loop exit
PB: predicated region body
PF: predicated region fallthrough
CT: control target
= control target key end

     0   :  { %8 = vsyncpa [#allocation3], 0  ;;  %s370_s0 = inlined_call_operand.hbm [shape: f32[2,128], index: 0, kind: input, shape index: {}]   ;;  %s371_s1 = inlined_call_operand.hbm [shape: bf16[128,128], index: 1, kind: input, shape index: {}]   ;;  %s372_s2 = inlined_call_operand.vmem [shape: f32[1,128], index: 2, kind: input, shape index: {}]   ;;  %s373_s3 = inlined_call_operand.hbm [shape: f32[2,128], index: 3, kind: output, shape index: {}]  }
   0x1   :  { %9 = vsyncpa [#allocation6], 0 }
   0x2   :  { %10 = vsyncpa [#allocation4], 0  ;;  %s297_s12 = smov [#allocation2]   ;;  %s298_s14 = smov [#allocation5]  }
   0x3   :  { %s17_s13 = sshll.u32 %s297_s12, 4  ;;  %s26_s15 = sshll.u32 %s298_s14, 4  ;;  %s18_s13 = int_to_ptr.vmem [resolvable:$true] %s17_s13  ;;  %s324_s15 = int_to_ptr.vmem [resolvable:$true] %s26_s15 }
   0x4   :  { %s225_s18 = scalar_lea.hbm %s370_s0, 32 }
   0x5   :  { %p226_p0 = scmp.ne.s32.totalorder %s370_s0, %s225_s18  ;;  %p229_p1 = scmp.lt.u32.totalorder %s225_s18, %s370_s0 }
   0x7   :  { %p231_p2 = pnand %p229_p1, %p226_p0 }
   0x9   :  { %234 = shalt.err (!%p231_p2)
}
   0xa   :  { %s235_s23 = scalar_lea.vmem %s18_s13, 32  ;;  %p240_p4 = scmp.lt.s32.totalorder %s18_s13, %s18_s13 }
   0xb   :  { %p236_p3 = scmp.ne.s32.totalorder %s18_s13, %s235_s23  ;;  %p241_p5 = scmp.lt.s32.totalorder %s235_s23, %s235_s23 }
   0xd   :  { %p242_p6 = por %p241_p5, %p240_p4 }
   0xf   :  { %p243_p7 = pnand %p242_p6, %p236_p3 }
  0x11   :  { %246 = shalt.err (!%p243_p7)
}
  0x12   :  { %20 = dma.hbm_to_vmem [thread:$0]  %s370_s0, 32, %s18_s13, [#allocation3]  }
  0x13   :  { %s247_s28 = scalar_lea.hbm %s371_s1, 1024 }
  0x14   :  { %p248_p8 = scmp.ne.s32.totalorder %s371_s1, %s247_s28  ;;  %p251_p9 = scmp.lt.u32.totalorder %s247_s28, %s371_s1 }
  0x16   :  { %p253_p10 = pnand %p251_p9, %p248_p8 }
  0x18   :  { %256 = shalt.err (!%p253_p10)
}
  0x19   :  { %s257_s6 = scalar_lea.vmem %s324_s15, 1024  ;;  %p262_p12 = scmp.lt.s32.totalorder %s324_s15, %s324_s15 }
  0x1a   :  { %p258_p11 = scmp.ne.s32.totalorder %s324_s15, %s257_s6  ;;  %p263_p13 = scmp.lt.s32.totalorder %s257_s6, %s257_s6 }
  0x1c   :  { %p264_p0 = por %p263_p13, %p262_p12 }
  0x1e   :  { %p265_p1 = pnand %p264_p0, %p258_p11 }
  0x20   :  { %268 = shalt.err (!%p265_p1)
}
  0x21   :  { %s299_s0 = smov 64   ;;  %s300_s7 = smov 4  }
  0x22   :  { %32 = dma.hbm_to_vmem [thread:$0]  %s371_s1, 1024, %s324_s15, [#allocation6], %s299_s0, %s299_s0, %s300_s7  }
  0x23   :  { %291 = dma.done.wait [#allocation3], 32  }
  0x24   :  { %292 = vsyncadd [#allocation3], 4294967264 }
  0x25   :  { %293 = dma.done.wait [#allocation6], 1024  }
  0x26   :  { %294 = vsyncadd [#allocation6], 4294966272  ;;  %v301_v0 = vmov 0.0   ;;  %vm302_vm0 = vmmov 0   ;;  %v217_v1 = vld [vmem:[#allocation5] sm:$0xff]   ;;  %v218_v2 = vld [vmem:[#allocation5 + $0x8] sm:$0xff]  }
  0x27   :  { %190 = vmatprep.subr.bf16.mxu0 %v301_v0  ;;  %206 = vmatprep.mubr.msk.bf16.mxu0 %vm302_vm0, %v301_v0  ;;  %v219_v3 = vld [vmem:[#allocation5 + $0x10] sm:$0xff]   ;;  %v220_v4 = vld [vmem:[#allocation5 + $0x18] sm:$0xff]   ;;  %v221_v5 = vld [vmem:[#allocation5 + $0x20] sm:$0xff]   ;;  %s303_s11 = smov [#allocation7]  }
  0x28   :  { %191 = vmatpush3.bf16.msra.mxu0 %v217_v1  ;;  %v222_v6 = vld [vmem:[#allocation5 + $0x28] sm:$0xff]   ;;  %v223_v7 = vld [vmem:[#allocation5 + $0x30] sm:$0xff]   ;;  %v224_v8 = vld [vmem:[#allocation5 + $0x38] sm:$0xff]   ;;  %s162_s12 = sshll.u32 %s303_s11, 4  ;;  %s163_s12 = int_to_ptr.vmem [resolvable:$true] %s162_s12 }
  0x29   :  { %192 = vmatprep.subr.bf16.mxu0 %v301_v0  ;;  %v42_v9 = vld [vmem:[#allocation2] sm:$0x3]  ;;  %s269_s13 = scalar_lea.vmem %s163_s12, 32  ;;  %p274_p3 = scmp.lt.s32.totalorder %s163_s12, %s163_s12 }
  0x2a   :  { %v43_v10 = vpack.c.bf16 %v42_v9, %v42_v9  ;;  %v172_v11 = vld [vmem:[%s372_s2] ss:$0 sm:$0xff]  ;;  %p270_p2 = scmp.ne.s32.totalorder %s163_s12, %s269_s13  ;;  %p275_p4 = scmp.lt.s32.totalorder %s269_s13, %s269_s13 }
  0x2c   :  { %193 = vmatpush3.bf16.msra.mxu0 %v218_v2  ;;  %p276_p5 = por %p275_p4, %p274_p3 }
  0x2d   :  { %194 = vmatprep.subr.bf16.mxu0 %v301_v0 }
  0x2e   :  { %p277_p6 = pnand %p276_p5, %p270_p2 }
  0x30   :  { %195 = vmatpush3.bf16.msra.mxu0 %v219_v3 }
  0x31   :  { %196 = vmatprep.subr.bf16.mxu0 %v301_v0 }
  0x34   :  { %197 = vmatpush3.bf16.msra.mxu0 %v220_v4 }
  0x35   :  { %198 = vmatprep.subr.bf16.mxu0 %v301_v0 }
  0x38   :  { %199 = vmatpush3.bf16.msra.mxu0 %v221_v5 }
  0x39   :  { %200 = vmatprep.subr.bf16.mxu0 %v301_v0 }
  0x3c   :  { %201 = vmatpush3.bf16.msra.mxu0 %v222_v6 }
  0x3d   :  { %202 = vmatprep.subr.bf16.mxu0 %v301_v0 }
  0x40   :  { %203 = vmatpush3.bf16.msra.mxu0 %v223_v7 }
  0x41   :  { %204 = vmatprep.subr.bf16.mxu0 %v301_v0 }
  0x44   :  { %205 = vmatpush3.bf16.msra.mxu0 %v224_v8 }
  0x47   :  { %207 = vmatmul.mubr.bf16.vlgmr.msra.gmra.mrb[0].mxu0 %v43_v10 }
 0x11a   :  { %v149_v12 = vpop.f32.mrb[0].mxu0 }
 0x11b   :  { %v150_v13 = vadd.f32 %v172_v11, %v149_v12  ;;  %v208_v14 = vpop.f32.mrb[1].mxu0 }
 0x11c   :  { %v152_v15 = vpop.f32.mrb[2].mxu0 }
 0x11d   :  { %155 = vst [vmem:[#allocation7] sm:$0x3] %v150_v13  ;;  %v209_v16 = vpop.f32.mrb[3].mxu0 }
 0x11e   :  { %280 = shalt.err (!%p277_p6)
}
 0x11f   :  { %s281_s2 = scalar_lea.hbm %s373_s3, 32 }
 0x120   :  { %p282_p7 = scmp.ne.s32.totalorder %s373_s3, %s281_s2  ;;  %p285_p8 = scmp.lt.u32.totalorder %s281_s2, %s373_s3 }
 0x122   :  { %p287_p9 = pnand %p285_p8, %p282_p7 }
 0x124   :  { %290 = shalt.err (!%p287_p9)
}
 0x125   :  { %165 = dma.vmem_to_hbm [thread:$0]  %s163_s12, 32, %s373_s3, [#allocation4]  }
 0x126   :  { %295 = dma.done.wait [#allocation4], 32  }
 0x127   :  { %296 = vsyncadd [#allocation4], 4294967264 }
 0x128   :  { %169 = vsyncpa [#allocation3], 1 }
 0x129   :  { %170 = vsyncpa [#allocation6], 1 }
 0x12a   :  { %171 = vsyncpa [#allocation4], 1 }

</bundles_post_ra>
